<compile_context>
chip_gen: v5e
topology: v5e:2x2
jax: 0.10.0
libtpu: 0.0.40
codegen_flags: <defaults>
</compile_context>

<pallas_src>
import functools

import jax
import jax.numpy as jnp
from jax.experimental import pallas as pl
from jax.experimental.pallas import tpu as pltpu


def _adaln_kernel(x_ref, emb_ref, w2_ref, vec_ref, o_ref, *, eps, d_model):
    D = d_model

    # --- Adaptive scale/shift: one fused (TM, D) @ (D, 2D) MXU matmul. ---
    # Operands stay in their native dtype (bf16 fast path); accumulate in f32.
    proj = jnp.dot(emb_ref[...], w2_ref[...],
                   preferred_element_type=jnp.float32)          # (TM, 2D) f32

    vecs = vec_ref[...].astype(jnp.float32)                     # (4, D)
    gamma = vecs[0:1, :]
    beta = vecs[1:2, :]
    bias_w = vecs[2:3, :]
    bias_b = vecs[3:4, :]

    w_ada = proj[:, :D] + bias_w                                # (TM, D)
    b_ada = proj[:, D:] + bias_b                                # (TM, D)

    # --- LayerNorm over last dim (biased variance), f32, one-pass stats. ---
    x = x_ref[...].astype(jnp.float32)                          # (TM, D)
    mean = jnp.mean(x, axis=-1, keepdims=True)
    mean_sq = jnp.mean(x * x, axis=-1, keepdims=True)
    var = jnp.maximum(mean_sq - mean * mean, 0.0)
    normed = (x - mean) * jax.lax.rsqrt(var + eps)
    normed = normed * gamma + beta

    o_ref[...] = (w_ada * normed + b_ada).astype(o_ref.dtype)


def adaptive_layer_norm(x, embedding, proj_w, proj_b, ln_gamma, ln_beta,
                        *, eps=1e-5, row_tile=256):
    """x, embedding: (B, T, D). proj_w: (2D, D) (torch Linear layout), proj_b: (2D,)."""
    B, T, D = x.shape
    assert embedding.shape == (B, T, D)
    N = B * T

    # Row tile: big (amortize ~0.35us/step overhead, fill the MXU), multiple of
    # 8 sublanes, never larger than the (padded) row count.
    if row_tile >= N:
        tile = N
        n_pad = N
    else:
        tile = max(8, (row_tile // 8) * 8)
        n_pad = ((N + tile - 1) // tile) * tile

    x2 = x.reshape(N, D)
    e2 = embedding.reshape(N, D)
    if n_pad != N:
        pad = n_pad - N
        x2 = jnp.pad(x2, ((0, pad), (0, 0)))
        e2 = jnp.pad(e2, ((0, pad), (0, 0)))

    # torch Linear computes emb @ W.T + b with W of shape (2D, D); fuse both
    # halves into a single (D, 2D) RHS kept in the matmul (embedding) dtype.
    w2 = proj_w.T.astype(embedding.dtype)                       # (D, 2D)

    # Pack gamma, beta and the two projection-bias halves into one (4, D) input.
    vecs = jnp.stack(
        [ln_gamma, ln_beta, proj_b[:D], proj_b[D:]], axis=0
    ).astype(jnp.float32)                                       # (4, D)

    grid = (n_pad // tile,)
    row_spec = pl.BlockSpec((tile, D), lambda i: (i, 0))
    w2_spec = pl.BlockSpec((D, 2 * D), lambda i: (0, 0))
    vec_spec = pl.BlockSpec((4, D), lambda i: (0, 0))

    # VMEM budget: double-buffered x/emb/out row tiles + resident weights.
    itemsize = jnp.dtype(x.dtype).itemsize
    w_itemsize = jnp.dtype(w2.dtype).itemsize
    vmem_needed = (3 * 2 * tile * D * itemsize            # x, emb, out (x2 bufs)
                   + 2 * D * (2 * D) * w_itemsize         # fused weights (x2 bufs)
                   + 2 * 4 * D * 4)                       # packed vectors
    vmem_limit = int(min(max(2 * vmem_needed, 32 * 1024 * 1024),
                         64 * 1024 * 1024))               # cap: safe on v7x

    out = pl.pallas_call(
        functools.partial(_adaln_kernel, eps=eps, d_model=D),
        out_shape=jax.ShapeDtypeStruct((n_pad, D), x.dtype),
        grid_spec=pltpu.PrefetchScalarGridSpec(
            num_scalar_prefetch=0,
            grid=grid,
            in_specs=[row_spec, row_spec,   # x, emb
                      w2_spec,              # fused (D, 2D) projection weight
                      vec_spec],            # packed gamma/beta/bias_w/bias_b
            out_specs=row_spec,
        ),
        compiler_params=pltpu.CompilerParams(
            dimension_semantics=("parallel",),
            vmem_limit_bytes=vmem_limit),
    )(x2, e2, w2, vecs)

    # TODO(synk): for D >= 2048 on v7x (64 MiB VMEM) add a K-tiled reduction
    # grid axis over the weight matrix instead of keeping it fully resident.

    if n_pad != N:
        out = out[:N]
    return out.reshape(B, T, D)


def _reference(x, embedding, proj_w, proj_b, ln_gamma, ln_beta, eps=1e-5):
    proj = jnp.einsum("btd,od->bto", embedding, proj_w) + proj_b
    D = x.shape[-1]
    w_ada, b_ada = proj[..., :D], proj[..., D:]
    mean = jnp.mean(x, axis=-1, keepdims=True)
    var = jnp.mean((x - mean) ** 2, axis=-1, keepdims=True)
    normed = (x - mean) * jax.lax.rsqrt(var + eps)
    normed = normed * ln_gamma + ln_beta
    return w_ada * normed + b_ada


if __name__ == "__main__":
    B, T, D = 2, 8, 32
    key = jax.random.PRNGKey(0)
    k_x, k_e, k_w, k_b, k_g, k_bt = jax.random.split(key, 6)

    x = jax.random.normal(k_x, (B, T, D), dtype=jnp.float32)
    emb = jax.random.normal(k_e, (B, T, D), dtype=jnp.float32)

    # Deterministic parameter init (shapes from nn.Linear(d_model, 2*d_model)
    # and nn.LayerNorm(d_model)).
    bound = 1.0 / (D ** 0.5)
    proj_w = jax.random.uniform(k_w, (2 * D, D), minval=-bound, maxval=bound,
                                dtype=jnp.float32)
    proj_b = jax.random.uniform(k_b, (2 * D,), minval=-bound, maxval=bound,
                                dtype=jnp.float32)
    ln_gamma = jnp.ones((D,), dtype=jnp.float32)
    ln_beta = jnp.zeros((D,), dtype=jnp.float32)

    out = adaptive_layer_norm(x, emb, proj_w, proj_b, ln_gamma, ln_beta)
    out = jax.block_until_ready(out)

    ref = _reference(x, emb, proj_w, proj_b, ln_gamma, ln_beta)
    assert out.shape == (B, T, D)
    assert jnp.allclose(out, ref, atol=1e-4, rtol=1e-4), "mismatch vs reference"

    print("KERNEL_OK")
</pallas_src>

<mosaic_0001>
module attributes {stable_mosaic.version = 11 : i64} {
  func.func @_adaln_kernel(%arg0: i32, %arg1: memref<16x32xf32, #tpu.memory_space<vmem>>, %arg2: memref<16x32xf32, #tpu.memory_space<vmem>>, %arg3: memref<32x64xf32, #tpu.memory_space<vmem>>, %arg4: memref<4x32xf32, #tpu.memory_space<vmem>>, %arg5: memref<16x32xf32, #tpu.memory_space<vmem>>) attributes {dimension_semantics = [#tpu.dimension_semantics<parallel>], iteration_bounds = array<i64: 1>, scalar_prefetch = 0 : i64, scratch_operands = 0 : i64, tpu.core_type = #tpu.core_type<tc>, window_params = [{transform_indices = @transform_0, window_bounds = array<i64: 16, 32>}, {transform_indices = @transform_1, window_bounds = array<i64: 16, 32>}, {pipeline_mode = #tpu.pipeline_mode<synchronous>, transform_indices = @transform_2, window_bounds = array<i64: 32, 64>}, {pipeline_mode = #tpu.pipeline_mode<synchronous>, transform_indices = @transform_3, window_bounds = array<i64: 4, 32>}, {transform_indices = @transform_4, window_bounds = array<i64: 16, 32>}]} {
    %c0 = arith.constant 0 : index
    %c0_0 = arith.constant 0 : index
    %0 = vector.load %arg2[%c0, %c0_0] : memref<16x32xf32, #tpu.memory_space<vmem>>, vector<16x32xf32>
    %c0_1 = arith.constant 0 : index
    %c0_2 = arith.constant 0 : index
    %1 = vector.load %arg3[%c0_1, %c0_2] : memref<32x64xf32, #tpu.memory_space<vmem>>, vector<32x64xf32>
    %cst = arith.constant dense<0.000000e+00> : vector<16x64xf32>
    %2 = tpu.matmul %0, %1, %cst {dimension_numbers = #tpu.dot_dimension_numbers<[1], [0], [0], [1], [0, 0, 1, 1], [], []>} : vector<16x32xf32>, vector<32x64xf32>, vector<16x64xf32> -> vector<16x64xf32>
    %c0_3 = arith.constant 0 : index
    %c0_4 = arith.constant 0 : index
    %3 = vector.load %arg4[%c0_3, %c0_4] : memref<4x32xf32, #tpu.memory_space<vmem>>, vector<4x32xf32>
    %4 = vector.extract_strided_slice %3 {offsets = [0, 0], sizes = [1, 32], strides = [1, 1]} : vector<4x32xf32> to vector<1x32xf32>
    %5 = vector.extract_strided_slice %3 {offsets = [1, 0], sizes = [1, 32], strides = [1, 1]} : vector<4x32xf32> to vector<1x32xf32>
    %6 = vector.extract_strided_slice %3 {offsets = [2, 0], sizes = [1, 32], strides = [1, 1]} : vector<4x32xf32> to vector<1x32xf32>
    %7 = vector.extract_strided_slice %3 {offsets = [3, 0], sizes = [1, 32], strides = [1, 1]} : vector<4x32xf32> to vector<1x32xf32>
    %8 = vector.extract_strided_slice %2 {offsets = [0, 0], sizes = [16, 32], strides = [1, 1]} : vector<16x64xf32> to vector<16x32xf32>
    %9 = vector.broadcast %6 : vector<1x32xf32> to vector<16x32xf32>
    %10 = arith.addf %8, %9 : vector<16x32xf32>
    %11 = vector.extract_strided_slice %2 {offsets = [0, 32], sizes = [16, 32], strides = [1, 1]} : vector<16x64xf32> to vector<16x32xf32>
    %12 = vector.broadcast %7 : vector<1x32xf32> to vector<16x32xf32>
    %13 = arith.addf %11, %12 : vector<16x32xf32>
    %c0_5 = arith.constant 0 : index
    %c0_6 = arith.constant 0 : index
    %14 = vector.load %arg1[%c0_5, %c0_6] : memref<16x32xf32, #tpu.memory_space<vmem>>, vector<16x32xf32>
    %cst_7 = arith.constant dense<0.000000e+00> : vector<16xf32>
    %15 = vector.multi_reduction <add>, %14, %cst_7 [1] : vector<16x32xf32> to vector<16xf32>
    %16 = vector.shape_cast %15 : vector<16xf32> to vector<16x1xf32>
    %cst_8 = arith.constant 3.200000e+01 : f32
    %17 = vector.broadcast %cst_8 : f32 to vector<16x1xf32>
    %18 = arith.divf %16, %17 : vector<16x1xf32>
    %19 = arith.mulf %14, %14 : vector<16x32xf32>
    %cst_9 = arith.constant dense<0.000000e+00> : vector<16xf32>
    %20 = vector.multi_reduction <add>, %19, %cst_9 [1] : vector<16x32xf32> to vector<16xf32>
    %21 = vector.shape_cast %20 : vector<16xf32> to vector<16x1xf32>
    %cst_10 = arith.constant 3.200000e+01 : f32
    %22 = vector.broadcast %cst_10 : f32 to vector<16x1xf32>
    %23 = arith.divf %21, %22 : vector<16x1xf32>
    %24 = arith.mulf %18, %18 : vector<16x1xf32>
    %25 = arith.subf %23, %24 : vector<16x1xf32>
    %cst_11 = arith.constant 0.000000e+00 : f32
    %26 = vector.broadcast %cst_11 : f32 to vector<16x1xf32>
    %27 = arith.maximumf %25, %26 : vector<16x1xf32>
    %28 = vector.broadcast %18 : vector<16x1xf32> to vector<16x32xf32>
    %29 = arith.subf %14, %28 : vector<16x32xf32>
    %cst_12 = arith.constant 9.99999974E-6 : f32
    %30 = vector.broadcast %cst_12 : f32 to vector<16x1xf32>
    %31 = arith.addf %27, %30 : vector<16x1xf32>
    %32 = math.rsqrt %31 : vector<16x1xf32>
    %33 = vector.broadcast %32 : vector<16x1xf32> to vector<16x32xf32>
    %34 = arith.mulf %29, %33 : vector<16x32xf32>
    %35 = vector.broadcast %4 : vector<1x32xf32> to vector<16x32xf32>
    %36 = arith.mulf %34, %35 : vector<16x32xf32>
    %37 = vector.broadcast %5 : vector<1x32xf32> to vector<16x32xf32>
    %38 = arith.addf %36, %37 : vector<16x32xf32>
    %39 = arith.mulf %10, %38 : vector<16x32xf32>
    %40 = arith.addf %39, %13 : vector<16x32xf32>
    %c0_13 = arith.constant 0 : index
    %c0_14 = arith.constant 0 : index
    %41 = vector.load %arg5[%c0_13, %c0_14] : memref<16x32xf32, #tpu.memory_space<vmem>>, vector<16x32xf32>
    tpu.vector_store %arg5[%c0_13, %c0_14], %40 {strides = array<i32>} : memref<16x32xf32, #tpu.memory_space<vmem>>, vector<16x32xf32>,
    return
  }
  func.func @transform_0(%arg0: i32) -> (i32, i32) {
    %c0_i32 = arith.constant 0 : i32
    %c0_i32_0 = arith.constant 0 : i32
    return %arg0, %c0_i32 : i32, i32
  }
  func.func @transform_1(%arg0: i32) -> (i32, i32) {
    %c0_i32 = arith.constant 0 : i32
    %c0_i32_0 = arith.constant 0 : i32
    return %arg0, %c0_i32 : i32, i32
  }
  func.func @transform_2(%arg0: i32) -> (i32, i32) {
    %c0_i32 = arith.constant 0 : i32
    %c0_i32_0 = arith.constant 0 : i32
    %c0_i32_1 = arith.constant 0 : i32
    return %c0_i32, %c0_i32_0 : i32, i32
  }
  func.func @transform_3(%arg0: i32) -> (i32, i32) {
    %c0_i32 = arith.constant 0 : i32
    %c0_i32_0 = arith.constant 0 : i32
    %c0_i32_1 = arith.constant 0 : i32
    return %c0_i32, %c0_i32_0 : i32, i32
  }
  func.func @transform_4(%arg0: i32) -> (i32, i32) {
    %c0_i32 = arith.constant 0 : i32
    %c0_i32_0 = arith.constant 0 : i32
    return %arg0, %c0_i32 : i32, i32
  }
}

</mosaic_0001>

<bundles_post_ra>
// kernel: tpu_custom_call.1
= control target key start
LH: loop header
LB: loop body
LE: loop exit
PB: predicated region body
PF: predicated region fallthrough
CT: control target
= control target key end

     0   :  { %9 = vsyncpa [#allocation3], 0  ;;  %s462_s0 = inlined_call_operand.hbm [shape: f32[16,32], index: 0, kind: input, shape index: {}]   ;;  %s463_s1 = inlined_call_operand.hbm [shape: f32[16,32], index: 1, kind: input, shape index: {}]   ;;  %s464_s2 = inlined_call_operand.hbm [shape: f32[32,64], index: 2, kind: input, shape index: {}]   ;;  %s465_s3 = inlined_call_operand.hbm [shape: f32[4,32], index: 3, kind: input, shape index: {}]   ;;  %s466_s4 = inlined_call_operand.hbm [shape: f32[16,32], index: 4, kind: output, shape index: {}]  }
   0x1   :  { %10 = vsyncpa [#allocation6], 0 }
   0x2   :  { %11 = vsyncpa [#allocation9], 0 }
   0x3   :  { %12 = vsyncpa [#allocation4], 0  ;;  %s30_s17 = sshll.u32 %s463_s1, 4  ;;  %s376_s18 = smov [#allocation5]   ;;  %s31_s17 = int_to_ptr.hbm [resolvable:$true] %s30_s17 }
   0x4   :  { %s32_s19 = sshll.u32 %s376_s18, 4  ;;  %s17_s22 = sshll.u32 %s462_s0, 4  ;;  %s33_s19 = int_to_ptr.vmem [resolvable:$true] %s32_s19  ;;  %s18_s22 = int_to_ptr.hbm [resolvable:$true] %s17_s22 }
   0x5   :  { %s377_s23 = smov 128   ;;  %s378_s24 = smov 8  }
   0x6   :  { %38 = dma.hbm_to_vmem [thread:$0]  %s31_s17, 256, %s33_s19, [#allocation6], %s377_s23, %s377_s23, %s378_s24  }
   0x7   :  { %s379_s25 = smov [#allocation2]   ;;  %s43_s1 = sshll.u32 %s464_s2, 4  ;;  %s44_s1 = int_to_ptr.hbm [resolvable:$true] %s43_s1 }
   0x8   :  { %s19_s26 = sshll.u32 %s379_s25, 4  ;;  %s57_s30 = sshll.u32 %s465_s3, 4  ;;  %s20_s26 = int_to_ptr.vmem [resolvable:$true] %s19_s26  ;;  %s58_s30 = int_to_ptr.hbm [resolvable:$true] %s57_s30 }
   0x9   :  { %25 = dma.hbm_to_vmem [thread:$0]  %s18_s22, 256, %s20_s26, [#allocation3], %s377_s23, %s377_s23, %s378_s24  }
   0xa   :  { %s380_s5 = smov [#allocation7]   ;;  %s381_s7 = smov [#allocation8]  }
   0xb   :  { %s45_s6 = sshll.u32 %s380_s5, 4  ;;  %s59_s2 = sshll.u32 %s381_s7, 4  ;;  %s46_s6 = int_to_ptr.vmem [resolvable:$true] %s45_s6  ;;  %s60_s2 = int_to_ptr.vmem [resolvable:$true] %s59_s2 }
   0xc   :  { %51 = dma.hbm_to_vmem [thread:$0]  %s44_s1, 512, %s46_s6, [#allocation6], %s377_s23, %s377_s23, %s378_s24  }
   0xd   :  { %62 = dma.hbm_to_vmem [thread:$0]  %s58_s30, 64, %s60_s2, [#allocation9]  }
   0xe   :  { %368 = dma.done.wait [#allocation3], 256  }
   0xf   :  { %369 = vsyncadd [#allocation3], 4294967040 }
  0x10   :  { %370 = dma.done.wait [#allocation6], 768  }
  0x11   :  { %371 = vsyncadd [#allocation6], 4294966528 }
  0x12   :  { %372 = dma.done.wait [#allocation9], 64  }
  0x13   :  { %373 = vsyncadd [#allocation9], 4294967232  ;;  %vm85_vm0 = vcmask 261120   ;;  %v84_v0 = vld [vmem:[#allocation7 + $0x18] sm:$0xff]  ;;  %v432_v1 = vld [vmem:[#allocation2 + $0x8] sm:$0xff]  ;;  %s382_s3 = smov 32  }
  0x14   :  { %v434_v2 = vld [vmem:[#allocation8] sm:$0xf]  ;;  %104 = vmatpush.msra.mxu0 %v84_v0  ;;  %228 = vmatpush.msra.mxu1 %v84_v0  ;;  %v131_v3 = vsel %vm85_vm0, %v432_v1, 0.0  ;;  %v83_v5 = vld [vmem:[#allocation7 + $0x10] sm:$0xff]  ;;  %v144_v6 = vmul.f32 %v432_v1, %v432_v1  ;;  %v82_v7 = vld [vmem:[#allocation7 + $0x8] sm:$0xff]  ;;  %v383_v20 = vmov 32.0  }
  0x15   :  { %v119_v4 = vperm.slane %v434_v2, 3  ;;  %132 = vadd.xlane.f32.xlu1 %v131_v3  ;;  %v81_v9 = vld [vmem:[#allocation7] sm:$0xff]  ;;  %v79_v10 = vld [vmem:[#allocation5] sm:$0xff]  ;;  %v80_v11 = vld [vmem:[#allocation5 + $0x8] sm:$0xff]  ;;  %242 = vrcp.f32 %v383_v20  ;;  %s384_s8 = smov 96   ;;  %v185_v55 = vperm.slane %v434_v2, 0 }
  0x16   :  { %105 = vmatpush.msra.mxu0 %v83_v5  ;;  %v148_v8 = vsel %vm85_vm0, %v144_v6, 0.0  ;;  %229 = vmatpush.msra.mxu1 %v83_v5  ;;  %v126_v12 = vld [vmem:[#allocation2] sm:$0xff]  ;;  %v188_v58 = vperm.slane %v434_v2, 1  ;;  %v116_v59 = vperm.slane %v434_v2, 2  ;;  %s385_s9 = smov [#allocation10]   ;;  %s211_s13 = sshll.u32 %s466_s4, 4  ;;  %s212_s13 = int_to_ptr.hbm [resolvable:$true] %s211_s13 }
  0x17   :  { %121 = vrot.lane.b32.xlu0 %v119_v4, %s382_s3  ;;  %149 = vadd.xlane.f32.xlu2 %v148_v8  ;;  %v143_v13 = vmul.f32 %v126_v12, %v126_v12  ;;  %v128_v15 = vsel %vm85_vm0, %v126_v12, 0.0  ;;  %s209_s10 = sshll.u32 %s385_s9, 4  ;;  %s210_s10 = int_to_ptr.vmem [resolvable:$true] %s209_s10 }
  0x18   :  { %106 = vmatpush.msra.mxu0 %v82_v7  ;;  %230 = vmatpush.msra.mxu1 %v82_v7 }
  0x19   :  { %v145_v14 = vsel %vm85_vm0, %v143_v13, 0.0 }
  0x1a   :  { %107 = vmatpush.msra.mxu0 %v81_v9  ;;  %231 = vmatpush.msra.mxu1 %v81_v9 }
  0x1b   :  { %226 = vmatmul.msk.f32.vlgmr.msra.gmra.mxu0 %vm85_vm0, %v79_v10  ;;  %227 = vmatmul.msk.f32.vlgmr.msra.gmra.mxu1 %vm85_vm0, %v80_v11  ;;  %v243_v22 = vpop.eup %242 }
  0x1c   :  { %v135_v23 = vmul.f32 32.0, %v243_v22  ;;  %vm139_vm1 = vweird.f32 %v243_v22 }
  0x1d   :  { %146 = vadd.xlane.f32.xlu1 %v145_v14 }
  0x1e   :  { %v136_v24 = vsub.f32 1.0, %v135_v23 }
  0x20   :  { %v137_v25 = vmul.f32 %v243_v22, %v136_v24 }
  0x22   :  { %v138_v27 = vadd.f32 %v243_v22, %v137_v25 }
  0x24   :  { %v140_v28 = vsel %vm139_vm1, %v243_v22, %v138_v27 }
  0x41   :  { %129 = vadd.xlane.f32.xlu0 %v128_v15 }
  0x88   :  { %v133_v26 = vpop.xlane.xlu1 %132 }
  0x89   :  { %v122_v16 = vpop.permute.xlu0 %121  ;;  %v142_v37 = vmul.f32 %v140_v28, %v133_v26 }
  0x8a   :  { %v150_v39 = vpop.xlane.xlu2 %149 }
  0x8b   :  { %v154_v40 = vmul.f32 %v142_v37, %v142_v37  ;;  %v152_v41 = vmul.f32 %v150_v39, %v140_v28  ;;  %v160_v6 = vsub.f32 %v432_v1, %v142_v37 }
  0x8d   :  { %v156_v43 = vsub.f32 %v152_v41, %v154_v40 }
  0x8f   :  { %v158_v45 = vmax.f32 %v156_v43, 0.0 }
  0x90   :  { %v147_v31 = vpop.xlane.xlu1 %146 }
  0x91   :  { %v151_v33 = vmul.f32 %v147_v31, %v140_v28  ;;  %v162_v47 = vadd.f32 1e-05, %v158_v45 }
  0x93   :  { %vm179_vm5 = vweird.f32 %v162_v47 }
  0x98   :  { %v109_v17 = vpop.f32.mrf.mxu0  ;;  %v446_v19 = vpop.f32.mrf.mxu1 }
  0x99   :  { %v124_v18 = vadd.f32 %v122_v16, %v109_v17  ;;  %v125_v21 = vadd.f32 %v122_v16, %v446_v19  ;;  %v117_v62 = vadd.f32 %v116_v59, %v109_v17  ;;  %v118_v2 = vadd.f32 %v116_v59, %v446_v19 }
  0x9b   :  { %195 = vrot.lane.b32.xlu2 %v124_v18, %s384_s8  ;;  %197 = vrot.lane.b32.xlu1 %v125_v21, %s384_s8 }
  0xb4   :  { %v130_v29 = vpop.xlane.xlu0 %129 }
  0xb5   :  { %v141_v30 = vmul.f32 %v140_v28, %v130_v29 }
  0xb7   :  { %v153_v32 = vmul.f32 %v141_v30, %v141_v30  ;;  %v159_v50 = vsub.f32 %v126_v12, %v141_v30 }
  0xb9   :  { %v155_v34 = vsub.f32 %v151_v33, %v153_v32 }
  0xbb   :  { %v157_v35 = vmax.f32 %v155_v34, 0.0 }
  0xbd   :  { %v161_v36 = vadd.f32 1e-05, %v157_v35 }
  0xbf   :  { %244 = vrsqrt.f32 %v161_v36  ;;  %vm169_vm2 = vweird.f32 %v161_v36 }
  0xc0   :  { %246 = vrsqrt.f32 %v162_v47 }
  0xc5   :  { %v245_v38 = vpop.eup %244 }
  0xc6   :  { %v164_v42 = vmul.f32 %v245_v38, %v161_v36  ;;  %vm170_vm3 = vweird.f32 %v245_v38  ;;  %v247_v52 = vpop.eup %246 }
  0xc7   :  { %vm171_vm4 = vmor %vm169_vm2, %vm170_vm3  ;;  %v174_v54 = vmul.f32 %v247_v52, %v162_v47  ;;  %vm180_vm6 = vweird.f32 %v247_v52 }
  0xc8   :  { %v165_v44 = vmul.f32 %v245_v38, %v164_v42  ;;  %vm181_vm7 = vmor %vm179_vm5, %vm180_vm6 }
  0xc9   :  { %v175_v57 = vmul.f32 %v247_v52, %v174_v54 }
  0xca   :  { %v166_v46 = vmul.f32 0.5, %v165_v44 }
  0xcb   :  { %v176_v61 = vmul.f32 0.5, %v175_v57 }
  0xcc   :  { %v167_v48 = vsub.f32 1.5, %v166_v46 }
  0xcd   :  { %v177_v3 = vsub.f32 1.5, %v176_v61 }
  0xce   :  { %v168_v49 = vmul.f32 %v245_v38, %v167_v48 }
  0xcf   :  { %v178_v5 = vmul.f32 %v247_v52, %v177_v3 }
  0xd0   :  { %v172_v51 = vsel %vm171_vm4, %v245_v38, %v168_v49 }
  0xd1   :  { %v183_v53 = vmul.f32 %v172_v51, %v159_v50  ;;  %v182_v7 = vsel %vm181_vm7, %v247_v52, %v178_v5 }
  0xd2   :  { %v184_v8 = vmul.f32 %v182_v7, %v160_v6 }
  0xd3   :  { %v186_v56 = vmul.f32 %v185_v55, %v183_v53 }
  0xd4   :  { %v187_v9 = vmul.f32 %v185_v55, %v184_v8 }
  0xd5   :  { %v189_v60 = vadd.f32 %v188_v58, %v186_v56 }
  0xd6   :  { %v190_v10 = vadd.f32 %v188_v58, %v187_v9 }
  0xd7   :  { %v191_v63 = vmul.f32 %v189_v60, %v117_v62 }
  0xd8   :  { %v192_v11 = vmul.f32 %v190_v10, %v118_v2 }
  0xf5   :  { %v196_v0 = vpop.permute.xlu2 %195 }
  0xf6   :  { %v201_v4 = vadd.f32 %v196_v0, %v191_v63 }
  0xf8   :  { %203 = vst.msk [vmem:[#allocation10] sm:$0xff] %vm85_vm0, %v201_v4 }
 0x10d   :  { %v198_v12 = vpop.permute.xlu1 %197 }
 0x10e   :  { %v202_v13 = vadd.f32 %v198_v12, %v192_v11 }
 0x110   :  { %204 = vst.msk [vmem:[#allocation10 + $0x8] sm:$0xff] %vm85_vm0, %v202_v13 }
 0x111   :  { %217 = dma.vmem_to_hbm [thread:$0]  %s210_s10, 256, %s212_s13, [#allocation4], %s377_s23, %s377_s23, %s378_s24  }
 0x112   :  { %374 = dma.done.wait [#allocation4], 256  }
 0x113   :  { %375 = vsyncadd [#allocation4], 4294967040 }
 0x114   :  { %222 = vsyncpa [#allocation3], 1 }
 0x115   :  { %223 = vsyncpa [#allocation6], 1 }
 0x116   :  { %224 = vsyncpa [#allocation9], 1 }
 0x117   :  { %225 = vsyncpa [#allocation4], 1 }

</bundles_post_ra>
